<compile_context>
chip_gen: v5e
topology: v5e:2x2
jax: 0.10.0
libtpu: 0.0.40
codegen_flags: <defaults>
</compile_context>

<pallas_src>
import numpy as np
import jax
import jax.numpy as jnp
from jax.experimental import pallas as pl
from jax.experimental.pallas import tpu as pltpu

EPS = 1e-10
_LANE = 128


def _round_up(x, m):
    return -(-x // m) * m


def _make_hist_kernel(lo, inv_delta, uniform_bins):
    lo = float(lo)
    inv_delta = float(inv_delta)

    def kernel(obs_ref, w_ref, edges_ref, hist_ref, sq_ref):
        # Zero the per-core accumulators on the first inner (sample-chunk) step.
        @pl.when(pl.program_id(1) == 0)
        def _init():
            hist_ref[...] = jnp.zeros_like(hist_ref)
            sq_ref[...] = jnp.zeros_like(sq_ref)

        # Per-sample prologue: O(TN) work, hoisted out of the (Bpad, TN) region.
        u = (obs_ref[...] - lo) * inv_delta          # (1, TN) scaled observable
        w = w_ref[...]                               # (1, TN) sample weights

        l = edges_ref[:, 0:1]                        # (Bpad, 1) scaled left edge
        r = edges_ref[:, 2:3]                        # (Bpad, 1) scaled right edge

        if uniform_bins:
            # Bin centers are exact midpoints -> where(u<m, u-l, r-u) is
            # identical to min(u-l, r-u): saves a compare+select pass.
            tri = jnp.minimum(u - l, r - u)                      # (Bpad, TN)
        else:
            m = edges_ref[:, 1:2]                                # scaled center edge
            tri = jnp.where(u < m, u - l, r - u)                 # (Bpad, TN)

        # Fused triangular-kernel contribution; values outside [h_l, h_r) are
        # clipped to zero, exactly reproducing the reference dual-mask sums.
        contrib = jnp.maximum(tri, 0.0) * w                      # (Bpad, TN)

        # Accumulate per-core partial sums (resident in VMEM across the inner
        # grid axis; only written back to HBM when the core index changes).
        hist_ref[...] += jnp.sum(contrib, axis=-1, keepdims=True)          # (Bpad, 1)
        sq_ref[...] += jnp.sum(contrib * contrib, axis=-1, keepdims=True)  # (Bpad, 1)

    return kernel


def pseudo_chi2_loss(sim_observable, exp_observable, weights, bin_table, histo_exp,
                     *, max_tile=65536):
    """Matches PseudoChiSquareLoss.forward with fixed_binning=True.

    exp_observable is accepted for API parity but (as in the reference
    fixed_binning branch) unused: the experimental histogram is a parameter.
    """
    del exp_observable
    bin_table = np.asarray(bin_table, dtype=np.float32)
    histo_exp = np.asarray(histo_exp, dtype=np.float32)
    nbins = len(bin_table) - 1
    lo, hi = float(bin_table[0]), float(bin_table[-1])
    delta = (hi - lo) / nbins
    inv_delta = 1.0 / delta

    bpad = max(8, _round_up(nbins, 8))

    # ---- Generation-aware VMEM budget and sample-tile sizing -----------------
    try:
        vmem_cap = int(pltpu.get_tpu_info().vmem_capacity_bytes)
    except Exception:
        vmem_cap = 64 * 1024 * 1024                 # conservative (v7x-sized) fallback
    vmem_limit = int(min(vmem_cap // 2, 64 * 1024 * 1024))

    # Per-lane working set: ~4 live (bpad, TN) f32 temporaries + a few (1, TN)
    # per-sample rows.  Keep it under half of vmem_limit for headroom (inputs
    # are double-buffered on top of this but are comparatively tiny).
    per_lane_bytes = 16 * bpad + 16
    tn_cap = max(_LANE, ((vmem_limit // 2) // per_lane_bytes) // _LANE * _LANE)
    tn_cap = min(tn_cap, _round_up(int(max_tile), _LANE))

    n = int(np.prod(sim_observable.shape))
    nchunks = max(1, -(-n // tn_cap))
    # Balance chunk sizes so tail padding is bounded (< one 128-lane row of slack
    # per chunk), and force tn to a multiple of 128 (lane divisibility rule).
    tn = _round_up(-(-n // nchunks), _LANE)
    nchunks = -(-n // tn)

    ncores = 2 if nchunks >= 2 else 1               # megacore ("parallel") axis
    inner = -(-nchunks // ncores)                   # sequential accumulate axis
    npad = ncores * inner * tn

    # Padded lanes carry weight 0, so they contribute exactly nothing.
    obs_flat = jnp.asarray(sim_observable, jnp.float32).reshape(-1)
    w_flat = jnp.asarray(weights, jnp.float32).reshape(-1)
    obs_p = jnp.zeros((1, npad), jnp.float32).at[0, :n].set(obs_flat)
    w_p = jnp.zeros((1, npad), jnp.float32).at[0, :n].set(w_flat)

    # Scaled per-bin edge tables merged into a single resident (bpad, 3) input
    # [left, center, right].  Only bins 1..nbins-2 are active (matching the
    # reference torch loop); inactive / padded bins get l = m = r = 0, which
    # makes their contribution exactly zero after the clip.
    edges = np.zeros((bpad, 3), np.float32)
    for d in range(1, nbins - 1):
        edges[d, 0] = (bin_table[d - 1] - lo) * inv_delta
        edges[d, 1] = (bin_table[d] - lo) * inv_delta
        edges[d, 2] = (bin_table[d + 1] - lo) * inv_delta

    # Only fuse where()->minimum() when every bin center is the midpoint of its
    # neighbours (true for uniform fixed binning); otherwise keep the exact
    # reference formulation.
    centers = bin_table[1:-1]
    mids = 0.5 * (bin_table[:-2] + bin_table[2:])
    uniform_bins = bool(np.allclose(centers, mids, rtol=0.0, atol=1e-3 * delta))

    sample_spec = pl.BlockSpec((1, tn), lambda c, i: (0, c * inner + i))
    edge_spec = pl.BlockSpec((bpad, 3), lambda c, i: (0, 0))            # resident
    acc_spec = pl.BlockSpec((None, bpad, 1), lambda c, i: (c, 0, 0))    # per-core accumulator

    cost = pl.CostEstimate(
        flops=8 * bpad * npad,
        transcendentals=0,
        bytes_accessed=8 * npad + 12 * bpad + 8 * ncores * bpad)

    hist_parts, sq_parts = pl.pallas_call(
        _make_hist_kernel(lo, inv_delta, uniform_bins),
        out_shape=(jax.ShapeDtypeStruct((ncores, bpad, 1), jnp.float32),
                   jax.ShapeDtypeStruct((ncores, bpad, 1), jnp.float32)),
        grid=(ncores, inner),
        in_specs=[sample_spec, sample_spec, edge_spec],
        out_specs=(acc_spec, acc_spec),
        compiler_params=pltpu.CompilerParams(
            dimension_semantics=("parallel", "arbitrary"),
            vmem_limit_bytes=vmem_limit),
        cost_estimate=cost,
    )(obs_p, w_p, jnp.asarray(edges))

    # O(nbins) chi^2 finalize in plain JAX (negligible work; keeps the sample
    # streaming fully inside the kernel with a parallel core axis).
    hist = jnp.sum(hist_parts[:, :nbins, 0], axis=0)                    # (nbins,)
    sq = jnp.sum(sq_parts[:, :nbins, 0], axis=0)                        # (nbins,)

    exp_sum = float(histo_exp.sum())
    exp_norm = jnp.asarray(histo_exp / exp_sum, jnp.float32)
    unc_exp = jnp.asarray(
        histo_exp * (1.0 - histo_exp / exp_sum) / (exp_sum + EPS) ** 2 + EPS,
        jnp.float32)

    sum_hist = jnp.sum(hist)
    unc_sim = sq / (sum_hist + EPS) ** 2 + EPS
    hist_norm = hist / sum_hist   # matches reference (no EPS); NaN if all weights vanish
    chi2 = (hist_norm - exp_norm) ** 2 / (unc_sim + unc_exp)
    return jnp.sum(chi2)


def _reference_numpy(sim_observable, weights, bin_table, histo_exp):
    """Pure-numpy port of the torch reference (fixed_binning branch)."""
    obs = np.asarray(sim_observable, np.float32)
    w = np.asarray(weights, np.float32)
    bt = np.asarray(bin_table, np.float32)
    he = np.asarray(histo_exp, np.float32)
    nbins = len(bt) - 1
    delta = (bt[-1] - bt[0]) / nbins

    hist = np.zeros(nbins, np.float32)
    sq = np.zeros(nbins, np.float32)
    for d in range(1, nbins - 1):
        h_l, h_m, h_r = bt[d - 1], bt[d], bt[d + 1]
        m_sub = ((h_m > obs) & (obs >= h_l)).astype(np.float32)
        m_plus = ((h_r > obs) & (obs >= h_m)).astype(np.float32)
        sw = (obs - h_l) / delta * w * m_sub
        pw = (h_r - obs) / delta * w * m_plus
        hist[d] = sw.sum() + pw.sum()
        sq[d] = (sw ** 2).sum() + (pw ** 2).sum()

    exp_sum = he.sum()
    unc_sim = sq / (hist.sum() + EPS) ** 2 + EPS
    unc_exp = he * (1.0 - he / exp_sum) / (exp_sum + EPS) ** 2 + EPS
    hist_n = hist / hist.sum()
    exp_n = he / exp_sum
    return float((((hist_n - exp_n) ** 2) / (unc_sim + unc_exp)).sum())


if __name__ == "__main__":
    key = jax.random.PRNGKey(0)
    k1, k2, k3 = jax.random.split(key, 3)

    n_samples = 200
    nbins = 20

    # Deterministic "parameters" (stand-ins for bins/monash_binning.npy etc.)
    # TODO(synk): the reference loads these tables from .npy files and has a
    # matplotlib `print_details` plotting branch; both are replaced by
    # in-script parameters / omitted (no compute semantics involved).
    bin_table = np.linspace(0.0, 1.0, nbins + 1, dtype=np.float32)
    histo_exp = (50.0 + 10.0 * np.arange(nbins)).astype(np.float32)

    sim_observable = jax.random.uniform(k1, (n_samples,), jnp.float32, 0.0, 1.0)
    exp_observable = jax.random.uniform(k2, (n_samples,), jnp.float32, 0.0, 1.0)  # unused (fixed binning)
    weights = jax.random.uniform(k3, (n_samples,), jnp.float32, 0.5, 1.5)

    loss = pseudo_chi2_loss(sim_observable, exp_observable, weights, bin_table, histo_exp)
    loss = jax.block_until_ready(loss)

    ref = _reference_numpy(np.asarray(sim_observable), np.asarray(weights), bin_table, histo_exp)
    np.testing.assert_allclose(float(loss), ref, rtol=2e-3, atol=1e-3)

    print("KERNEL_OK")
</pallas_src>

<mosaic_0001>
module attributes {stable_mosaic.version = 11 : i64} {
  func.func @kernel(%arg0: i32, %arg1: i32, %arg2: memref<1x256xf32, #tpu.memory_space<vmem>>, %arg3: memref<1x256xf32, #tpu.memory_space<vmem>>, %arg4: memref<24x3xf32, #tpu.memory_space<vmem>>, %arg5: memref<1x24x1xf32, #tpu.memory_space<vmem>>, %arg6: memref<1x24x1xf32, #tpu.memory_space<vmem>>) attributes {dimension_semantics = [#tpu.dimension_semantics<parallel>, #tpu.dimension_semantics<arbitrary>], iteration_bounds = array<i64: 1, 1>, scalar_prefetch = 0 : i64, scratch_operands = 0 : i64, tpu.core_type = #tpu.core_type<tc>, window_params = [{transform_indices = @transform_0, window_bounds = array<i64: 1, 256>}, {transform_indices = @transform_1, window_bounds = array<i64: 1, 256>}, {pipeline_mode = #tpu.pipeline_mode<synchronous>, transform_indices = @transform_2, window_bounds = array<i64: 24, 3>}, {transform_indices = @transform_3, window_bounds = array<i64: 1, 24, 1>}, {transform_indices = @transform_4, window_bounds = array<i64: 1, 24, 1>}]} {
    %c0_i32 = arith.constant 0 : i32
    %0 = arith.cmpi eq, %arg1, %c0_i32 : i32
    %1 = arith.extui %0 : i1 to i32
    %c0_i32_0 = arith.constant 0 : i32
    %2 = arith.cmpi ne, %1, %c0_i32_0 : i32
    scf.if %2 {
      %cst_23 = arith.constant 0.000000e+00 : f32
      %39 = vector.broadcast %cst_23 : f32 to vector<24x1xf32>
      %c0_24 = arith.constant 0 : index
      %c0_25 = arith.constant 0 : index
      %c0_26 = arith.constant 0 : index
      %40 = vector.load %arg5[%c0_24, %c0_25, %c0_26] : memref<1x24x1xf32, #tpu.memory_space<vmem>>, vector<1x24x1xf32>
      %41 = vector.shape_cast %40 : vector<1x24x1xf32> to vector<24x1xf32>
      %42 = vector.shape_cast %39 : vector<24x1xf32> to vector<1x24x1xf32>
      tpu.vector_store %arg5[%c0_24, %c0_25, %c0_26], %42 {strides = array<i32>} : memref<1x24x1xf32, #tpu.memory_space<vmem>>, vector<1x24x1xf32>,
      %cst_27 = arith.constant 0.000000e+00 : f32
      %43 = vector.broadcast %cst_27 : f32 to vector<24x1xf32>
      %c0_28 = arith.constant 0 : index
      %c0_29 = arith.constant 0 : index
      %c0_30 = arith.constant 0 : index
      %44 = vector.load %arg6[%c0_28, %c0_29, %c0_30] : memref<1x24x1xf32, #tpu.memory_space<vmem>>, vector<1x24x1xf32>
      %45 = vector.shape_cast %44 : vector<1x24x1xf32> to vector<24x1xf32>
      %46 = vector.shape_cast %43 : vector<24x1xf32> to vector<1x24x1xf32>
      tpu.vector_store %arg6[%c0_28, %c0_29, %c0_30], %46 {strides = array<i32>} : memref<1x24x1xf32, #tpu.memory_space<vmem>>, vector<1x24x1xf32>,
    } else {
    }
    %c0 = arith.constant 0 : index
    %c0_1 = arith.constant 0 : index
    %3 = vector.load %arg2[%c0, %c0_1] : memref<1x256xf32, #tpu.memory_space<vmem>>, vector<1x256xf32>
    %cst = arith.constant 0.000000e+00 : f32
    %4 = vector.broadcast %cst : f32 to vector<1x256xf32>
    %5 = arith.subf %3, %4 : vector<1x256xf32>
    %cst_2 = arith.constant 2.000000e+01 : f32
    %6 = vector.broadcast %cst_2 : f32 to vector<1x256xf32>
    %7 = arith.mulf %5, %6 : vector<1x256xf32>
    %c0_3 = arith.constant 0 : index
    %c0_4 = arith.constant 0 : index
    %8 = vector.load %arg3[%c0_3, %c0_4] : memref<1x256xf32, #tpu.memory_space<vmem>>, vector<1x256xf32>
    %c0_5 = arith.constant 0 : index
    %c0_6 = arith.constant 0 : index
    %9 = vector.load %arg4[%c0_5, %c0_6] : memref<24x3xf32, #tpu.memory_space<vmem>>, vector<24x1xf32>
    %c0_7 = arith.constant 0 : index
    %c2 = arith.constant 2 : index
    %10 = vector.load %arg4[%c0_7, %c2] : memref<24x3xf32, #tpu.memory_space<vmem>>, vector<24x1xf32>
    %11 = vector.broadcast %7 : vector<1x256xf32> to vector<24x256xf32>
    %12 = vector.broadcast %9 : vector<24x1xf32> to vector<24x256xf32>
    %13 = arith.subf %11, %12 : vector<24x256xf32>
    %14 = vector.broadcast %10 : vector<24x1xf32> to vector<24x256xf32>
    %15 = vector.broadcast %7 : vector<1x256xf32> to vector<24x256xf32>
    %16 = arith.subf %14, %15 : vector<24x256xf32>
    %17 = arith.minimumf %13, %16 : vector<24x256xf32>
    %cst_8 = arith.constant 0.000000e+00 : f32
    %18 = vector.broadcast %cst_8 : f32 to vector<24x256xf32>
    %19 = arith.maximumf %17, %18 : vector<24x256xf32>
    %20 = vector.broadcast %8 : vector<1x256xf32> to vector<24x256xf32>
    %21 = arith.mulf %19, %20 : vector<24x256xf32>
    %c0_9 = arith.constant 0 : index
    %c0_10 = arith.constant 0 : index
    %c0_11 = arith.constant 0 : index
    %22 = vector.load %arg5[%c0_9, %c0_10, %c0_11] : memref<1x24x1xf32, #tpu.memory_space<vmem>>, vector<1x24x1xf32>
    %23 = vector.shape_cast %22 : vector<1x24x1xf32> to vector<24x1xf32>
    %cst_12 = arith.constant dense<0.000000e+00> : vector<24xf32>
    %24 = vector.multi_reduction <add>, %21, %cst_12 [1] : vector<24x256xf32> to vector<24xf32>
    %25 = vector.shape_cast %24 : vector<24xf32> to vector<24x1xf32>
    %26 = arith.addf %23, %25 : vector<24x1xf32>
    %c0_13 = arith.constant 0 : index
    %c0_14 = arith.constant 0 : index
    %c0_15 = arith.constant 0 : index
    %27 = vector.load %arg5[%c0_13, %c0_14, %c0_15] : memref<1x24x1xf32, #tpu.memory_space<vmem>>, vector<1x24x1xf32>
    %28 = vector.shape_cast %27 : vector<1x24x1xf32> to vector<24x1xf32>
    %29 = vector.shape_cast %26 : vector<24x1xf32> to vector<1x24x1xf32>
    tpu.vector_store %arg5[%c0_13, %c0_14, %c0_15], %29 {strides = array<i32>} : memref<1x24x1xf32, #tpu.memory_space<vmem>>, vector<1x24x1xf32>,
    %c0_16 = arith.constant 0 : index
    %c0_17 = arith.constant 0 : index
    %c0_18 = arith.constant 0 : index
    %30 = vector.load %arg6[%c0_16, %c0_17, %c0_18] : memref<1x24x1xf32, #tpu.memory_space<vmem>>, vector<1x24x1xf32>
    %31 = vector.shape_cast %30 : vector<1x24x1xf32> to vector<24x1xf32>
    %32 = arith.mulf %21, %21 : vector<24x256xf32>
    %cst_19 = arith.constant dense<0.000000e+00> : vector<24xf32>
    %33 = vector.multi_reduction <add>, %32, %cst_19 [1] : vector<24x256xf32> to vector<24xf32>
    %34 = vector.shape_cast %33 : vector<24xf32> to vector<24x1xf32>
    %35 = arith.addf %31, %34 : vector<24x1xf32>
    %c0_20 = arith.constant 0 : index
    %c0_21 = arith.constant 0 : index
    %c0_22 = arith.constant 0 : index
    %36 = vector.load %arg6[%c0_20, %c0_21, %c0_22] : memref<1x24x1xf32, #tpu.memory_space<vmem>>, vector<1x24x1xf32>
    %37 = vector.shape_cast %36 : vector<1x24x1xf32> to vector<24x1xf32>
    %38 = vector.shape_cast %35 : vector<24x1xf32> to vector<1x24x1xf32>
    tpu.vector_store %arg6[%c0_20, %c0_21, %c0_22], %38 {strides = array<i32>} : memref<1x24x1xf32, #tpu.memory_space<vmem>>, vector<1x24x1xf32>,
    return
  }
  func.func @transform_0(%arg0: i32, %arg1: i32) -> (i32, i32) {
    %c1_i32 = arith.constant 1 : i32
    %0 = arith.muli %arg0, %c1_i32 : i32
    %1 = arith.addi %0, %arg1 : i32
    %c0_i32 = arith.constant 0 : i32
    %c0_i32_0 = arith.constant 0 : i32
    return %c0_i32, %1 : i32, i32
  }
  func.func @transform_1(%arg0: i32, %arg1: i32) -> (i32, i32) {
    %c1_i32 = arith.constant 1 : i32
    %0 = arith.muli %arg0, %c1_i32 : i32
    %1 = arith.addi %0, %arg1 : i32
    %c0_i32 = arith.constant 0 : i32
    %c0_i32_0 = arith.constant 0 : i32
    return %c0_i32, %1 : i32, i32
  }
  func.func @transform_2(%arg0: i32, %arg1: i32) -> (i32, i32) {
    %c0_i32 = arith.constant 0 : i32
    %c0_i32_0 = arith.constant 0 : i32
    %c0_i32_1 = arith.constant 0 : i32
    return %c0_i32, %c0_i32_0 : i32, i32
  }
  func.func @transform_3(%arg0: i32, %arg1: i32) -> (i32, i32, i32) {
    %c0_i32 = arith.constant 0 : i32
    %c0_i32_0 = arith.constant 0 : i32
    %c0_i32_1 = arith.constant 0 : i32
    return %arg0, %c0_i32, %c0_i32_0 : i32, i32, i32
  }
  func.func @transform_4(%arg0: i32, %arg1: i32) -> (i32, i32, i32) {
    %c0_i32 = arith.constant 0 : i32
    %c0_i32_0 = arith.constant 0 : i32
    %c0_i32_1 = arith.constant 0 : i32
    return %arg0, %c0_i32, %c0_i32_0 : i32, i32, i32
  }
}

</mosaic_0001>

<bundles_post_ra>
// kernel: tpu_custom_call.1
= control target key start
LH: loop header
LB: loop body
LE: loop exit
PB: predicated region body
PF: predicated region fallthrough
CT: control target
= control target key end

     0   :  { %v203_v0 = vmov 0   ;;  %v204_v4 = vmov 2   ;;  %vm58_vm0 = vcmask 7168   ;;  %v205_v11 = vmov 0.0   ;;  %s312_s2 = inlined_call_operand.vmem [shape: f32[24,3], index: 2, kind: input, shape index: {}]   ;;  %s313_s0 = inlined_call_operand.vmem [shape: f32[1,256], index: 0, kind: input, shape index: {}]   ;;  %s314_s3 = inlined_call_operand.vmem [shape: f32[1,24,1], index: 3, kind: output, shape index: {0}]   ;;  %s315_s1 = inlined_call_operand.vmem [shape: f32[1,256], index: 1, kind: input, shape index: {}]   ;;  %s316_s4 = inlined_call_operand.vmem [shape: f32[1,24,1], index: 4, kind: output, shape index: {1}]  }
   0x1   :  { %199 = vset.pattern.permute.xlu1 %v203_v0  ;;  %198 = vset.pattern.permute.xlu0 %v203_v0  ;;  %v70_v1 = vld [vmem:[%s312_s2 + $0x10] sm:$0xff]  ;;  %v68_v2 = vld [vmem:[%s312_s2] sm:$0xff]  ;;  %v69_v3 = vld [vmem:[%s312_s2 + $0x8] sm:$0xff]  ;;  %61 = vst.msk [vmem:[%s314_s3 + $0x10] sm:$0xff] %vm58_vm0, %v205_v11 }
   0x2   :  { %88 = vperm.xlu1 %199, %v70_v1   ;;  %78 = vperm.xlu0 %198, %v68_v2   ;;  %v65_v6 = vld [vmem:[%s313_s0] sm:$0x3]  ;;  %59 = vst.msk [vmem:[%s314_s3] sm:$0xff] %vm58_vm0, %v205_v11 }
   0x3   :  { %201 = vset.pattern.permute.xlu2 %v204_v4  ;;  %v66_v7 = vmul.f32 20.0, %v65_v6  ;;  %60 = vst.msk [vmem:[%s314_s3 + $0x8] sm:$0xff] %vm58_vm0, %v205_v11  ;;  %v67_v16 = vld [vmem:[%s315_s1] sm:$0x3] }
   0x4   :  { %102 = vperm.xlu2 %201, %v69_v3   ;;  %v128_v21 = vperm.slane %v67_v16, 0  ;;  %v129_v22 = vperm.slane %v67_v16, 1  ;;  %62 = vst.msk [vmem:[%s316_s4] sm:$0xff] %vm58_vm0, %v205_v11 }
   0x5   :  { %v72_v8 = vperm.slane %v66_v7, 0  ;;  %v73_v9 = vperm.slane %v66_v7, 1  ;;  %63 = vst.msk [vmem:[%s316_s4 + $0x8] sm:$0xff] %vm58_vm0, %v205_v11 }
   0x6   :  { %64 = vst.msk [vmem:[%s316_s4 + $0x10] sm:$0xff] %vm58_vm0, %v205_v11 }
   0x8   :  { %v140_v61 = vld [vmem:[%s314_s3 + $0x10] sm:$0xff] }
   0xa   :  { %200 = vset.pattern.permute.xlu1 %v204_v4  ;;  %83 = vperm.xlu0 %198, %v69_v3   ;;  %v139_v0 = vld [vmem:[%s314_s3 + $0x8] sm:$0xff] }
   0xb   :  { %98 = vperm.xlu1 %200, %v68_v2  }
   0xc   :  { %106 = vperm.xlu2 %201, %v70_v1   ;;  %v138_v1 = vld [vmem:[%s314_s3] sm:$0xff] }
  0x12   :  { %202 = vset.pattern.permute.xlu0 %v204_v4 }
  0x5e   :  { %v103_v5 = vpop.permute.xlu2 %102 }
  0x5f   :  { %v111_v27 = vsub.f32 %v103_v5, %v72_v8  ;;  %v112_v29 = vsub.f32 %v103_v5, %v73_v9  ;;  %v157_v5 = vld [vmem:[%s316_s4] sm:$0xff] }
  0x66   :  { %v107_v10 = vpop.permute.xlu2 %106 }
  0x67   :  { %v113_v12 = vsub.f32 %v107_v10, %v72_v8  ;;  %v114_v13 = vsub.f32 %v107_v10, %v73_v9  ;;  %v158_v10 = vld [vmem:[%s316_s4 + $0x8] sm:$0xff] }
  0x74   :  { %v89_v14 = vpop.permute.xlu1 %88  ;;  %v79_v15 = vpop.permute.xlu0 %78 }
  0x75   :  { %v95_v17 = vsub.f32 %v72_v8, %v89_v14  ;;  %v96_v18 = vsub.f32 %v73_v9, %v89_v14  ;;  %v91_v34 = vsub.f32 %v72_v8, %v79_v15  ;;  %v92_v35 = vsub.f32 %v73_v9, %v79_v15 }
  0x77   :  { %v119_v19 = vmin.f32 %v95_v17, %v113_v12  ;;  %v120_v20 = vmin.f32 %v96_v18, %v114_v13 }
  0x79   :  { %v125_v23 = vmax.f32 %v119_v19, 0.0  ;;  %v126_v24 = vmax.f32 %v120_v20, 0.0 }
  0x7b   :  { %v136_v25 = vmul.f32 %v128_v21, %v125_v23  ;;  %v137_v26 = vmul.f32 %v129_v22, %v126_v24 }
  0x7c   :  { %v84_v28 = vpop.permute.xlu0 %83 }
  0x7d   :  { %v93_v30 = vsub.f32 %v72_v8, %v84_v28  ;;  %v94_v31 = vsub.f32 %v73_v9, %v84_v28  ;;  %v99_v32 = vpop.permute.xlu1 %98  ;;  %v147_v33 = vadd.f32 %v137_v26, %v136_v25  ;;  %v164_v55 = vmul.f32 %v136_v25, %v136_v25 }
  0x7e   :  { %v109_v36 = vsub.f32 %v99_v32, %v72_v8  ;;  %v110_v37 = vsub.f32 %v99_v32, %v73_v9  ;;  %v165_v56 = vmul.f32 %v137_v26, %v137_v26  ;;  %v159_v9 = vld [vmem:[%s316_s4 + $0x10] sm:$0xff] }
  0x7f   :  { %v117_v38 = vmin.f32 %v93_v30, %v111_v27  ;;  %v118_v39 = vmin.f32 %v94_v31, %v112_v29  ;;  %148 = vadd.xlane.f32.xlu2 %v147_v33 }
  0x80   :  { %v115_v40 = vmin.f32 %v91_v34, %v109_v36  ;;  %v116_v41 = vmin.f32 %v92_v35, %v110_v37  ;;  %v172_v59 = vadd.f32 %v165_v56, %v164_v55 }
  0x81   :  { %v123_v42 = vmax.f32 %v117_v38, 0.0  ;;  %v124_v43 = vmax.f32 %v118_v39, 0.0 }
  0x82   :  { %v121_v44 = vmax.f32 %v115_v40, 0.0  ;;  %v122_v45 = vmax.f32 %v116_v41, 0.0 }
  0x83   :  { %v134_v46 = vmul.f32 %v128_v21, %v123_v42  ;;  %v135_v47 = vmul.f32 %v129_v22, %v124_v43 }
  0x84   :  { %v132_v48 = vmul.f32 %v128_v21, %v121_v44  ;;  %v133_v49 = vmul.f32 %v129_v22, %v122_v45 }
  0x85   :  { %v144_v50 = vadd.f32 %v135_v47, %v134_v46  ;;  %v162_v57 = vmul.f32 %v134_v46, %v134_v46  ;;  %v163_v58 = vmul.f32 %v135_v47, %v135_v47 }
  0x86   :  { %v141_v51 = vadd.f32 %v133_v49, %v132_v48  ;;  %v160_v52 = vmul.f32 %v132_v48, %v132_v48  ;;  %v161_v53 = vmul.f32 %v133_v49, %v133_v49 }
  0x87   :  { %145 = vadd.xlane.f32.xlu1 %v144_v50  ;;  %v169_v60 = vadd.f32 %v163_v58, %v162_v57 }
  0x88   :  { %142 = vadd.xlane.f32.xlu0 %v141_v51  ;;  %v166_v54 = vadd.f32 %v161_v53, %v160_v52 }
  0x8a   :  { %167 = vadd.xlane.f32.xlu2 %v166_v54 }
  0x8f   :  { %173 = vadd.xlane.f32.xlu1 %v172_v59 }
  0x90   :  { %170 = vadd.xlane.f32.xlu0 %v169_v60 }
  0xf2   :  { %v149_v62 = vpop.xlane.xlu2 %148 }
  0xf3   :  { %v152_v63 = vadd.f32 %v149_v62, %v140_v61 }
  0xf5   :  { %156 = vst.msk [vmem:[%s314_s3 + $0x10] sm:$0xff] %vm58_vm0, %v152_v63 }
  0xfa   :  { %v146_v2 = vpop.xlane.xlu1 %145 }
  0xfb   :  { %v151_v3 = vadd.f32 %v146_v2, %v139_v0  ;;  %v143_v4 = vpop.xlane.xlu0 %142 }
  0xfc   :  { %v150_v6 = vadd.f32 %v143_v4, %v138_v1 }
  0xfd   :  { %155 = vst.msk [vmem:[%s314_s3 + $0x8] sm:$0xff] %vm58_vm0, %v151_v3  ;;  %v168_v7 = vpop.xlane.xlu2 %167 }
  0xfe   :  { %154 = vst.msk [vmem:[%s314_s3] sm:$0xff] %vm58_vm0, %v150_v6  ;;  %v175_v8 = vadd.f32 %v168_v7, %v157_v5 }
 0x100   :  { %178 = vst.msk [vmem:[%s316_s4] sm:$0xff] %vm58_vm0, %v175_v8 }
 0x102   :  { %v174_v11 = vpop.xlane.xlu1 %173 }
 0x103   :  { %v177_v12 = vadd.f32 %v174_v11, %v159_v9  ;;  %v171_v13 = vpop.xlane.xlu0 %170 }
 0x104   :  { %v176_v14 = vadd.f32 %v171_v13, %v158_v10 }
 0x105   :  { %180 = vst.msk [vmem:[%s316_s4 + $0x10] sm:$0xff] %vm58_vm0, %v177_v12 }
 0x106   :  { %179 = vst.msk [vmem:[%s316_s4 + $0x8] sm:$0xff] %vm58_vm0, %v176_v14 }

</bundles_post_ra>
